<compile_context>
chip_gen: v7x
topology: tpu7x:2x2x1
jax: 0.10.0
libtpu: 0.0.40
codegen_flags: <defaults>
</compile_context>

<pallas_src>
import jax
import jax.numpy as jnp
from jax import lax
from jax.experimental import pallas as pl
from jax.experimental.pallas import tpu as pltpu


def _round_up(a, b):
    return ((a + b - 1) // b) * b


def _sigmoid(x):
    # Exact rewrite of sigmoid as a single tanh -> one EUP transcendental per element.
    return 0.5 * jnp.tanh(0.5 * x) + 0.5


# ----------------------------- kernels --------------------------------------


def embed_kernel(x_ref, w_ref, b_ref, xe_ref, sq_ref):
    # embed_f realized as Linear(input_dim -> hidden): xe = x @ W + b.
    xe = jnp.dot(x_ref[...], w_ref[...], preferred_element_type=jnp.float32) + b_ref[...]
    xe_b = xe.astype(jnp.bfloat16)
    xe_ref[...] = xe_b
    # Squared norms from the SAME bf16-rounded values used by the bf16 gram matmul,
    # so diagonal distances stay ~0 (no catastrophic-cancellation drift).
    xf = xe_b.astype(jnp.float32)
    sq_ref[...] = jnp.sum(xf * xf, axis=-1, keepdims=True)


def rowsum_kernel(xq_ref, xk_ref, sqq_ref, sqk_ref, temp_ref, thr_ref, rowsum_ref):
    k = pl.program_id(1)

    @pl.when(k == 0)
    def _():
        rowsum_ref[...] = jnp.zeros_like(rowsum_ref)

    t = jnp.abs(temp_ref[0, 0])
    th = jnp.abs(thr_ref[0, 0])
    gram = lax.dot_general(xq_ref[...], xk_ref[...], (((1,), (1,)), ((), ())),
                           preferred_element_type=jnp.float32)       # (TQ, TK) f32
    d = jnp.maximum(sqq_ref[...] + sqk_ref[...] - 2.0 * gram, 0.0)
    a = _sigmoid(t * (th - d))
    rowsum_ref[...] += jnp.sum(a, axis=-1, keepdims=True)


def prescale_kernel(xe_ref, rowsum_ref, v_ref):
    rs = rowsum_ref[...]                                             # (T, 1) f32
    # Padded rows have rowsum == 0 exactly -> force their value rows to 0 (no NaN/inf).
    inv = jnp.where(rs > 0.0, 1.0 / jnp.maximum(rs, 1e-30), 0.0)
    v_ref[...] = (xe_ref[...].astype(jnp.float32) * inv).astype(v_ref.dtype)


def output_kernel(xq_ref, xk_ref, sqq_ref, sqk_ref, v_ref, temp_ref, thr_ref, out_ref):
    k = pl.program_id(1)

    @pl.when(k == 0)
    def _():
        out_ref[...] = jnp.zeros_like(out_ref)

    t = jnp.abs(temp_ref[0, 0])
    th = jnp.abs(thr_ref[0, 0])
    gram = lax.dot_general(xq_ref[...], xk_ref[...], (((1,), (1,)), ((), ())),
                           preferred_element_type=jnp.float32)       # (TQ, TK) f32
    d = jnp.maximum(sqq_ref[...] + sqk_ref[...] - 2.0 * gram, 0.0)
    a = _sigmoid(t * (th - d)).astype(jnp.bfloat16)
    out_ref[...] += jnp.dot(a, v_ref[...], preferred_element_type=jnp.float32)

    # TODO(synk): self.log('Zero neighbours', (W < 0.01).sum()) is a Lightning logging
    # side-effect with no Pallas equivalent; omitted.


# ----------------------------- wrapper ---------------------------------------


def continuous_dgm(x, w_embed, b_embed, temperature, threshold, *,
                   block_q=512, block_k=256):
    """x: (N, input_dim) f32; returns (N, hidden) f32 == (A / A.sum(1)) @ embed_f(x)."""
    # TODO(synk): only the 'euclidean' distance branch and the A-is-None embed path of
    # ContinuousDGM are implemented (hyperbolic/Poincare branch and embed_f(x, A) not
    # translated); embed_f is realized as a Linear layer.
    assert block_q % block_k == 0
    n, din = x.shape
    hid = w_embed.shape[1]
    hp = _round_up(hid, 128)                      # lane-dense padded hidden dim

    # --- tile plan: large query tiles, smaller streamed key tiles ---
    if n <= block_k:
        tk = tq = _round_up(max(n, 8), 8)
    elif n <= block_q:
        tk = block_k
        tq = _round_up(n, block_k)
    else:
        tk = block_k
        tq = block_q
    n_pad = _round_up(n, max(tq, tk))             # divisible by both tq and tk
    nb_q = n_pad // tq
    nb_k = n_pad // tk

    # --- padded / cast inputs (zero feature columns & zero rows; rows masked below) ---
    x_p = jnp.zeros((n_pad, din), jnp.bfloat16).at[:n, :].set(x.astype(jnp.bfloat16))
    w_p = jnp.zeros((din, hp), jnp.bfloat16).at[:, :hid].set(w_embed.astype(jnp.bfloat16))
    b_p = jnp.zeros((1, hp), jnp.float32).at[:, :hid].set(
        b_embed.reshape(1, hid).astype(jnp.float32))
    temp = jnp.asarray(temperature, jnp.float32).reshape(1, 1)
    thr = jnp.asarray(threshold, jnp.float32).reshape(1, 1)
    smem = pl.BlockSpec(memory_space=pltpu.MemorySpace.SMEM)

    # Explicit VMEM budget for the N^2 passes (double-buffered streamed tiles +
    # f32 output tile + gram/sigmoid intermediates + headroom); clamped to 64 MiB
    # so it is also a valid cap on v7x (64 MiB physical VMEM).
    n2_budget = (2 * ((tq + 2 * tk) * hp * 2 + (tq + tk) * 4)
                 + 2 * tq * hp * 4
                 + 4 * tq * tk * 4
                 + (4 << 20))
    vmem_limit = int(min(max(n2_budget, 32 << 20), 64 << 20))

    # --- 1) embed: xe (bf16, lane-padded) and sq = ||xe||^2 (f32), emitted once ---
    xe, sq_col = pl.pallas_call(
        embed_kernel,
        out_shape=(jax.ShapeDtypeStruct((n_pad, hp), jnp.bfloat16),
                   jax.ShapeDtypeStruct((n_pad, 1), jnp.float32)),
        grid=(nb_q,),
        in_specs=[
            pl.BlockSpec((tq, din), lambda i: (i, 0)),
            pl.BlockSpec((din, hp), lambda i: (0, 0)),
            pl.BlockSpec((1, hp), lambda i: (0, 0)),
        ],
        out_specs=(pl.BlockSpec((tq, hp), lambda i: (i, 0)),
                   pl.BlockSpec((tq, 1), lambda i: (i, 0))),
        compiler_params=pltpu.CompilerParams(dimension_semantics=("parallel",)),
    )(x_p, w_p, b_p)

    # Mask padded rows: a huge squared norm makes every affinity involving a padded
    # row underflow exactly to 0 (and the padded rowsum becomes exactly 0).
    if n_pad > n:
        sq_col = sq_col.at[n:, :].set(jnp.float32(3e30))
    sq_row = sq_col.reshape(1, n_pad)             # lane-dense key-side layout

    # --- 2) rowsum[j] = sum_k sigmoid(|T|(|th| - D[j,k]))  (flash-style reduction) ---
    rowsum = pl.pallas_call(
        rowsum_kernel,
        out_shape=jax.ShapeDtypeStruct((n_pad, 1), jnp.float32),
        grid=(nb_q, nb_k),
        in_specs=[
            pl.BlockSpec((tq, hp), lambda q, k: (q, 0)),   # query tile of xe
            pl.BlockSpec((tk, hp), lambda q, k: (k, 0)),   # streamed key tile of xe
            pl.BlockSpec((tq, 1), lambda q, k: (q, 0)),    # query squared norms
            pl.BlockSpec((1, tk), lambda q, k: (0, k)),    # key squared norms
            smem,                                          # temperature
            smem,                                          # threshold
        ],
        out_specs=pl.BlockSpec((tq, 1), lambda q, k: (q, 0)),
        compiler_params=pltpu.CompilerParams(
            dimension_semantics=("parallel", "arbitrary"),
            vmem_limit_bytes=vmem_limit),
    )(xe, xe, sq_col, sq_row, temp, thr)

    # --- 3) pre-scale the values once: v = xe / rowsum  (O(N*hid)) ---
    v = pl.pallas_call(
        prescale_kernel,
        out_shape=jax.ShapeDtypeStruct((n_pad, hp), jnp.bfloat16),
        grid=(nb_q,),
        in_specs=[pl.BlockSpec((tq, hp), lambda i: (i, 0)),
                  pl.BlockSpec((tq, 1), lambda i: (i, 0))],
        out_specs=pl.BlockSpec((tq, hp), lambda i: (i, 0)),
        compiler_params=pltpu.CompilerParams(dimension_semantics=("parallel",)),
    )(xe, rowsum)

    # --- 4) out[i] = sum_j A[i,j] * v[j]  == (A / A.sum(1)) @ xe ---
    out_p = pl.pallas_call(
        output_kernel,
        out_shape=jax.ShapeDtypeStruct((n_pad, hp), jnp.float32),
        grid=(nb_q, nb_k),
        in_specs=[
            pl.BlockSpec((tq, hp), lambda q, k: (q, 0)),   # query tile of xe
            pl.BlockSpec((tk, hp), lambda q, k: (k, 0)),   # streamed key tile of xe
            pl.BlockSpec((tq, 1), lambda q, k: (q, 0)),    # query squared norms
            pl.BlockSpec((1, tk), lambda q, k: (0, k)),    # key squared norms
            pl.BlockSpec((tk, hp), lambda q, k: (k, 0)),   # pre-scaled values
            smem,                                          # temperature
            smem,                                          # threshold
        ],
        out_specs=pl.BlockSpec((tq, hp), lambda q, k: (q, 0)),
        compiler_params=pltpu.CompilerParams(
            dimension_semantics=("parallel", "arbitrary"),
            vmem_limit_bytes=vmem_limit),
    )(xe, xe, sq_col, sq_row, v, temp, thr)

    return out_p[:n, :hid]


# ----------------------------- reference / test -------------------------------


def _reference(x, w_embed, b_embed, temperature, threshold):
    xe = x @ w_embed + b_embed
    sq = jnp.sum(xe * xe, axis=-1, keepdims=True)
    D = jnp.maximum(sq + sq.T - 2.0 * (xe @ xe.T), 0.0)
    A = jax.nn.sigmoid(jnp.abs(temperature) * (jnp.abs(threshold) - D))
    # Same broadcasting quirk as torch: column j divided by row-sum j (A is symmetric).
    W = A / jnp.sum(A, axis=1)
    return W @ xe


if __name__ == "__main__":
    # N=600 is small but exercises the real code paths: multi-tile (q, k) grid
    # (2 query tiles x 4 key tiles), N-padding to 1024 and padded-key masking.
    N, DIN, HID = 600, 16, 32
    key = jax.random.PRNGKey(0)
    kx, kw, kb = jax.random.split(key, 3)

    # Scale inputs so pairwise distances land in the sigmoid's active range and the
    # graph normalization is actually exercised (not a trivial near-identity A).
    x = 0.1 * jax.random.normal(kx, (N, DIN), dtype=jnp.float32)
    w_embed = jax.random.normal(kw, (DIN, HID), dtype=jnp.float32) / jnp.sqrt(DIN)
    b_embed = 0.01 * jax.random.normal(kb, (HID,), dtype=jnp.float32)
    temperature = 10.0   # nn.Parameter(torch.tensor(10.0))
    threshold = 0.5      # nn.Parameter(torch.tensor(0.5))

    out = continuous_dgm(x, w_embed, b_embed, temperature, threshold)
    out = jax.block_until_ready(out)

    ref = _reference(x, w_embed, b_embed, temperature, threshold)
    assert out.shape == (N, HID)
    max_err = float(jnp.max(jnp.abs(out - ref)))
    # Tolerance accounts for bf16 MXU operands (f32 accumulation) in the Pallas path.
    assert jnp.allclose(out, ref, atol=1e-2, rtol=1e-2), f"mismatch, max abs err={max_err}"

    print("KERNEL_OK")
</pallas_src>

<mosaic_0001>
module attributes {stable_mosaic.version = 11 : i64} {
  func.func @embed_kernel(%arg0: i32, %arg1: memref<512x16xbf16, #tpu.memory_space<vmem>>, %arg2: memref<16x128xbf16, #tpu.memory_space<vmem>>, %arg3: memref<1x128xf32, #tpu.memory_space<vmem>>, %arg4: memref<512x128xbf16, #tpu.memory_space<vmem>>, %arg5: memref<512x1xf32, #tpu.memory_space<vmem>>) attributes {dimension_semantics = [#tpu.dimension_semantics<parallel>], iteration_bounds = array<i64: 2>, scalar_prefetch = 0 : i64, scratch_operands = 0 : i64, tpu.core_type = #tpu.core_type<tc>, window_params = [{transform_indices = @transform_0, window_bounds = array<i64: 512, 16>}, {pipeline_mode = #tpu.pipeline_mode<synchronous>, transform_indices = @transform_1, window_bounds = array<i64: 16, 128>}, {pipeline_mode = #tpu.pipeline_mode<synchronous>, transform_indices = @transform_2, window_bounds = array<i64: 1, 128>}, {transform_indices = @transform_3, window_bounds = array<i64: 512, 128>}, {transform_indices = @transform_4, window_bounds = array<i64: 512, 1>}]} {
    %c0 = arith.constant 0 : index
    %c0_0 = arith.constant 0 : index
    %0 = vector.load %arg1[%c0, %c0_0] : memref<512x16xbf16, #tpu.memory_space<vmem>>, vector<512x16xbf16>
    %c0_1 = arith.constant 0 : index
    %c0_2 = arith.constant 0 : index
    %1 = vector.load %arg2[%c0_1, %c0_2] : memref<16x128xbf16, #tpu.memory_space<vmem>>, vector<16x128xbf16>
    %cst = arith.constant dense<0.000000e+00> : vector<512x128xf32>
    %2 = tpu.matmul %0, %1, %cst {dimension_numbers = #tpu.dot_dimension_numbers<[1], [0], [0], [1], [0, 0, 1, 1], [], []>} : vector<512x16xbf16>, vector<16x128xbf16>, vector<512x128xf32> -> vector<512x128xf32>
    %c0_3 = arith.constant 0 : index
    %c0_4 = arith.constant 0 : index
    %3 = vector.load %arg3[%c0_3, %c0_4] : memref<1x128xf32, #tpu.memory_space<vmem>>, vector<1x128xf32>
    %4 = vector.broadcast %3 : vector<1x128xf32> to vector<512x128xf32>
    %5 = arith.addf %2, %4 : vector<512x128xf32>
    %6 = arith.truncf %5 : vector<512x128xf32> to vector<512x128xbf16>
    %c0_5 = arith.constant 0 : index
    %c0_6 = arith.constant 0 : index
    %7 = vector.load %arg4[%c0_5, %c0_6] : memref<512x128xbf16, #tpu.memory_space<vmem>>, vector<512x128xbf16>
    tpu.vector_store %arg4[%c0_5, %c0_6], %6 {strides = array<i32>} : memref<512x128xbf16, #tpu.memory_space<vmem>>, vector<512x128xbf16>,
    %8 = arith.extf %6 : vector<512x128xbf16> to vector<512x128xf32>
    %9 = arith.mulf %8, %8 : vector<512x128xf32>
    %cst_7 = arith.constant dense<0.000000e+00> : vector<512xf32>
    %10 = vector.multi_reduction <add>, %9, %cst_7 [1] : vector<512x128xf32> to vector<512xf32>
    %11 = vector.shape_cast %10 : vector<512xf32> to vector<512x1xf32>
    %c0_8 = arith.constant 0 : index
    %c0_9 = arith.constant 0 : index
    %12 = vector.load %arg5[%c0_8, %c0_9] : memref<512x1xf32, #tpu.memory_space<vmem>>, vector<512x1xf32>
    tpu.vector_store %arg5[%c0_8, %c0_9], %11 {strides = array<i32>} : memref<512x1xf32, #tpu.memory_space<vmem>>, vector<512x1xf32>,
    return
  }
  func.func @transform_0(%arg0: i32) -> (i32, i32) {
    %c0_i32 = arith.constant 0 : i32
    %c0_i32_0 = arith.constant 0 : i32
    return %arg0, %c0_i32 : i32, i32
  }
  func.func @transform_1(%arg0: i32) -> (i32, i32) {
    %c0_i32 = arith.constant 0 : i32
    %c0_i32_0 = arith.constant 0 : i32
    %c0_i32_1 = arith.constant 0 : i32
    return %c0_i32, %c0_i32_0 : i32, i32
  }
  func.func @transform_2(%arg0: i32) -> (i32, i32) {
    %c0_i32 = arith.constant 0 : i32
    %c0_i32_0 = arith.constant 0 : i32
    %c0_i32_1 = arith.constant 0 : i32
    return %c0_i32, %c0_i32_0 : i32, i32
  }
  func.func @transform_3(%arg0: i32) -> (i32, i32) {
    %c0_i32 = arith.constant 0 : i32
    %c0_i32_0 = arith.constant 0 : i32
    return %arg0, %c0_i32 : i32, i32
  }
  func.func @transform_4(%arg0: i32) -> (i32, i32) {
    %c0_i32 = arith.constant 0 : i32
    %c0_i32_0 = arith.constant 0 : i32
    return %arg0, %c0_i32 : i32, i32
  }
}

</mosaic_0001>

<bundles_post_ra>
// kernel: tpu_custom_call.1
= control target key start
LH: loop header
LB: loop body
LE: loop exit
PB: predicated region body
PF: predicated region fallthrough
CT: control target
= control target key end

     0   :  { %10 = vsyncpa [#allocation3], 0  ;;  %s2813_s0 = inlined_call_operand.vmem [shape: bf16[1024,16], index: 0, kind: input, shape index: {}]   ;;  %s2814_s1 = inlined_call_operand.vmem [shape: bf16[16,128], index: 1, kind: input, shape index: {}]   ;;  %s2815_s2 = inlined_call_operand.vmem [shape: f32[1,128], index: 2, kind: input, shape index: {}]   ;;  %s2816_s3 = inlined_call_operand.hbm [shape: bf16[1024,128], index: 3, kind: output, shape index: {0}]   ;;  %s2817_s4 = inlined_call_operand.vmem [shape: f32[1024,1], index: 4, kind: output, shape index: {1}]  }
   0x1   :  { %12 = vsyncpa [#allocation3 + $0x1], 0  ;;  %s2257_s15 = smov 0   ;;  %s2259_s16 = smov 0  }
   0x2   :  { %s2261_s17 = smov 0   ;;  %s2263_s18 = smov 0  }
   0x3 LB: > { %s2278_s19 = sadd.s32 4294967295, %s2227_s18   ;;  %s1590_s20 = sadd.s32 4294967294, %s2227_s18   ;;  %s2227_s18 = sphi %s2263_s18, %s2823_s18   ;;  %s2223_s17 = sphi %s2261_s17, %s2822_s17   ;;  %s2219_s16 = sphi %s2259_s16, %s2821_s16   ;;  %s2215_s15 = sphi %s2257_s15, %s2820_s15  }
   0x4   : > { %s2282_s21 = sadd.s32 1, %s2227_s18   ;;  %s93_s22 = sadd.s32 1, %s2223_s17 }
   0x5   : > { %s90_s23 = ssub.s32 %s2227_s18, %s2282_s21  ;;  %p103_p0 = scmp.ne.s32.totalorder %s2223_s17, %s2219_s16 }
   0x6   : > { %p91_p1 = scmp.eq.s32.totalorder %s90_s23, 0  ;;  %p104_p2 = scmp.eq.s32.totalorder %s2278_s19, 1 }
   0x7   : > { %p109_p3 = scmp.ne.s32.totalorder %s2219_s16, %s2215_s15  ;;  %p110_p4 = scmp.eq.s32.totalorder %s1590_s20, 1 }
   0x8   : > { %s2293_s24 = scalar_select %p91_p1, %s2223_s17, %s93_s22  }
   0x9   : > { %p2295_p5 = por %p104_p2, %p103_p0  ;;  %p2299_p6 = por %p110_p4, %p109_p3 }
   0xa   : > { %p1593_p7 = scmp.ge.s32.totalorder %s2227_s18, 1  ;;  %p169_p8 = scmp.lt.s32.totalorder %s2227_s18, 3 }
   0xc   : > { %p170_p9 = pnand %p1593_p7, %p169_p8 }
   0xd   : > { %v2132_v0 = vld [vmem:[%s2814_s1] sm:$0xff] (!%p170_p9)   ;;  %s1595_s29 = sshll.u32 (!%p170_p9), %s2278_s19, 6  ;;  %vm453_vm0 = vcmask (!%p170_p9), 130048   ;;  %s190_s8 = sand.u32 (!%p170_p9), 1, %s2219_s16   ;;  %vm1415_vm1 = vcmask (!%p170_p9), 7168  }
   0xe   : > { %173 = sbr.rel (%p170_p9) target bundleno = 526 (0x20e), region = 32  ;;  %p201_p10 = scmp.lt.s32.totalorder (!%p170_p9), %s1595_s29, 127  ;;  %2023 = vmatprep.subr.bf16.mxu0 (!%p170_p9), %v2132_v0  ;;  %2089 = vmatprep.subr.bf16.mxu1 (!%p170_p9), %v2132_v0  ;;  %v2385_v34 = vld [vmem:[%s2815_s2] ss:$0 sm:$0xff] (!%p170_p9) }
   0xf   : > { %2024 = vmatpush3.bf16.msra.mxu0 (!%p170_p9), %v2132_v0  ;;  %2090 = vmatpush3.bf16.msra.mxu1 (!%p170_p9), %v2132_v0  ;;  %s1594_s11 = sshll.u32 (!%p170_p9), %s190_s8, 8  ;;  %s1798_s23 = sshll.u32 (!%p170_p9), %s2278_s19, 12 }
  0x10   : > { %s2397_s12 = scalar_lea.vmem (!%p170_p9), [#allocation2], %s1594_s11  ;;  %s2229_s6 = smov (!%p170_p9), [#allocation2]  }
  0x11   : > { %s1499_s5 = sshll.u32 (!%p170_p9), %s2397_s12, 4  ;;  %s2640_s5 = int_to_ptr.vmem [resolvable:$true] %s1499_s5 }
  0x12   : > { %s2165_s19 = scalar_lea.vmem (!%p170_p9), %s2640_s5, 4096 }
  0x13   : > { %p2166_p11 = scmp.ne.s32.totalorder (!%p170_p9), %s2640_s5, %s2165_s19 }
  0x15   : > { %s2825_s29 = smov (!%p201_p10, %s1595_s29), 127  ;;  %p2167_p12 = pnand %p2166_p11, %p2295_p5 }
  0x16   : > { %s1596_s30 = sshll.u32 %s2825_s29, 2  ;;  %s1598_s13 = sshll.u32 %s2825_s29, 3 }
  0x17   : > { %s2315_s7 = scalar_lea.vmem %s2813_s0, %s1596_s30  ;;  %s2631_s22 = scalar_lea.vmem %s2817_s4, %s1598_s13 }
  0x18   : > { %v2133_v1 = vld [vmem:[%s2315_s7] sm:$0xff]   ;;  %v2135_v3 = vld [vmem:[%s2315_s7 + $0x8] sm:$0xff]   ;;  %v2137_v5 = vld [vmem:[%s2315_s7 + $0x10] sm:$0xff]   ;;  %s2637_s30 = scalar_lea.hbm %s2816_s3, %s1798_s23  ;;  %s2648_s29 = scalar_lea.sflag [#allocation3], %s190_s8 }
  0x19   : > { %v2134_v2 = vld [vmem:[%s2315_s7 + $0x80] sm:$0xff]   ;;  %2025 = vmatprep.mubr.msk.bf16.mxu0 %vm453_vm0, %v2133_v1  ;;  %v2136_v4 = vld [vmem:[%s2315_s7 + $0x88] sm:$0xff]   ;;  %v2139_v6 = vld [vmem:[%s2315_s7 + $0x90] sm:$0xff]   ;;  %p2168_p13 = pneg %p2167_p12 }
  0x1a   : > { %2057 = vmatprep.mubr.msk.bf16.mxu1 %vm453_vm0, %v2134_v2  ;;  %2026 = vmatmul.mubr.msk.bf16.vlgmr.msra.gmra.mrb[0].mxu0 %vm453_vm0, %v2135_v3  ;;  %v2138_v7 = vld [vmem:[%s2315_s7 + $0x18] sm:$0xff]   ;;  %v2141_v9 = vld [vmem:[%s2315_s7 + $0x20] sm:$0xff]   ;;  %v2142_v11 = vld [vmem:[%s2315_s7 + $0x28] sm:$0xff]  }
  0x1b   : > { %2058 = vmatmul.mubr.msk.bf16.vlgmr.msra.gmra.mrb[0].mxu1 %vm453_vm0, %v2136_v4  ;;  %2029 = vmatprep.mubr.msk.bf16.mxu0 %vm453_vm0, %v2137_v5  ;;  %v2140_v8 = vld [vmem:[%s2315_s7 + $0x98] sm:$0xff]   ;;  %v2143_v10 = vld [vmem:[%s2315_s7 + $0xa0] sm:$0xff]   ;;  %v2144_v12 = vld [vmem:[%s2315_s7 + $0xa8] sm:$0xff]  }
  0x1c   : > { %2061 = vmatprep.mubr.msk.bf16.mxu1 %vm453_vm0, %v2139_v6  ;;  %v2145_v13 = vld [vmem:[%s2315_s7 + $0x30] sm:$0xff]   ;;  %v2146_v15 = vld [vmem:[%s2315_s7 + $0x38] sm:$0xff]   ;;  %v2149_v17 = vld [vmem:[%s2315_s7 + $0x40] sm:$0xff]  }
  0x1d   : > { %v2147_v14 = vld [vmem:[%s2315_s7 + $0xb0] sm:$0xff]   ;;  %v2148_v16 = vld [vmem:[%s2315_s7 + $0xb8] sm:$0xff]   ;;  %v2151_v18 = vld [vmem:[%s2315_s7 + $0xc0] sm:$0xff]  }
  0x1e   : > { %v2150_v19 = vld [vmem:[%s2315_s7 + $0x48] sm:$0xff]   ;;  %v2153_v21 = vld [vmem:[%s2315_s7 + $0x50] sm:$0xff]   ;;  %v2154_v23 = vld [vmem:[%s2315_s7 + $0x58] sm:$0xff]  }
  0x1f   : > { %v2152_v20 = vld [vmem:[%s2315_s7 + $0xc8] sm:$0xff]   ;;  %v2155_v22 = vld [vmem:[%s2315_s7 + $0xd0] sm:$0xff]   ;;  %v2156_v24 = vld [vmem:[%s2315_s7 + $0xd8] sm:$0xff]  }
  0x20   : > { %v2157_v25 = vld [vmem:[%s2315_s7 + $0x60] sm:$0xff]   ;;  %v2158_v27 = vld [vmem:[%s2315_s7 + $0x68] sm:$0xff]   ;;  %v2161_v29 = vld [vmem:[%s2315_s7 + $0x70] sm:$0xff]  }
  0x21   : > { %v2159_v26 = vld [vmem:[%s2315_s7 + $0xe0] sm:$0xff]   ;;  %v2160_v28 = vld [vmem:[%s2315_s7 + $0xe8] sm:$0xff]   ;;  %v2163_v30 = vld [vmem:[%s2315_s7 + $0xf0] sm:$0xff]  }
  0x22   : > { %2030 = vmatmul.mubr.msk.bf16.gmra.mrb[4].mxu0 %vm453_vm0, %v2138_v7  ;;  %v2162_v31 = vld [vmem:[%s2315_s7 + $0x78] sm:$0xff]  }
  0x23   : > { %2062 = vmatmul.mubr.msk.bf16.gmra.mrb[4].mxu1 %vm453_vm0, %v2140_v8  ;;  %2033 = vmatprep.mubr.msk.bf16.mxu0 %vm453_vm0, %v2141_v9  ;;  %v2164_v32 = vld [vmem:[%s2315_s7 + $0xf8] sm:$0xff]   ;;  %s2169_s7 = sshll.u32 %s2229_s6, 4  ;;  %s2170_s7 = int_to_ptr.vmem [resolvable:$false] %s2169_s7 }
  0x24   : > { %2065 = vmatprep.mubr.msk.bf16.mxu1 %vm453_vm0, %v2143_v10  ;;  %s2171_s9 = scalar_lea.vmem %s2170_s7, 8192  ;;  %p2172_p0 = scmp.lt.s32.totalorder %s2640_s5, %s2170_s7 }
  0x25   : > { %p2173_p1 = scmp.lt.s32.totalorder %s2171_s9, %s2165_s19 }
  0x27   : > { %p2174_p2 = por %p2173_p1, %p2172_p0 }
  0x29   : > { %p2175_p3 = pnand %p2174_p2, %p2168_p13 }
  0x2a   : > { %2034 = vmatmul.mubr.msk.bf16.gmra.mrb[8].mxu0 %vm453_vm0, %v2142_v11 }
  0x2b   : > { %2066 = vmatmul.mubr.msk.bf16.gmra.mrb[8].mxu1 %vm453_vm0, %v2144_v12  ;;  %2037 = vmatprep.mubr.msk.bf16.mxu0 %vm453_vm0, %v2145_v13 }
  0x2c   : > { %2069 = vmatprep.mubr.msk.bf16.mxu1 %vm453_vm0, %v2147_v14 }
  0x32   : > { %2038 = vmatmul.mubr.msk.bf16.gmra.mrb[12].mxu0 %vm453_vm0, %v2146_v15 }
  0x33   : > { %2070 = vmatmul.mubr.msk.bf16.gmra.mrb[12].mxu1 %vm453_vm0, %v2148_v16  ;;  %2041 = vmatprep.mubr.msk.bf16.mxu0 %vm453_vm0, %v2149_v17 }
  0x34   : > { %2073 = vmatprep.mubr.msk.bf16.mxu1 %vm453_vm0, %v2151_v18 }
  0x3a   : > { %2042 = vmatmul.mubr.msk.bf16.gmra.mrb[16].mxu0 %vm453_vm0, %v2150_v19 }
  0x3b   : > { %2074 = vmatmul.mubr.msk.bf16.gmra.mrb[16].mxu1 %vm453_vm0, %v2152_v20  ;;  %2045 = vmatprep.mubr.msk.bf16.mxu0 %vm453_vm0, %v2153_v21 }
  0x3c   : > { %2077 = vmatprep.mubr.msk.bf16.mxu1 %vm453_vm0, %v2155_v22 }
  0x42   : > { %2046 = vmatmul.mubr.msk.bf16.gmra.mrb[20].mxu0 %vm453_vm0, %v2154_v23 }
  0x43   : > { %2078 = vmatmul.mubr.msk.bf16.gmra.mrb[20].mxu1 %vm453_vm0, %v2156_v24  ;;  %2049 = vmatprep.mubr.msk.bf16.mxu0 %vm453_vm0, %v2157_v25 }
  0x44   : > { %2081 = vmatprep.mubr.msk.bf16.mxu1 %vm453_vm0, %v2159_v26 }
  0x4a   : > { %2050 = vmatmul.mubr.msk.bf16.gmra.mrb[24].mxu0 %vm453_vm0, %v2158_v27 }
  0x4b   : > { %2082 = vmatmul.mubr.msk.bf16.gmra.mrb[24].mxu1 %vm453_vm0, %v2160_v28  ;;  %2053 = vmatprep.mubr.msk.bf16.mxu0 %vm453_vm0, %v2161_v29 }
  0x4c   : > { %2085 = vmatprep.mubr.msk.bf16.mxu1 %vm453_vm0, %v2163_v30 }
  0x52   : > { %2054 = vmatmul.mubr.msk.bf16.gmra.mrb[28].mxu0 %vm453_vm0, %v2162_v31 }
  0x53   : > { %2086 = vmatmul.mubr.msk.bf16.gmra.mrb[28].mxu1 %vm453_vm0, %v2164_v32 }
  0xed   : > { %v2027_v33 = vpop.f32.mrb[0].mxu0 }
  0xee   : > { %v2059_v35 = vpop.f32.mrb[0].mxu1  ;;  %v584_v36 = vpop.f32.mrb[1].mxu0  ;;  %v593_v39 = vadd.f32 %v2027_v33, %v2385_v34 }
  0xef   : > { %v712_v37 = vpop.f32.mrb[1].mxu1  ;;  %v2028_v38 = vpop.f32.mrb[2].mxu0  ;;  %v721_v43 = vadd.f32 %v2059_v35, %v2385_v34  ;;  %v585_v44 = vadd.f32 %v2385_v34, %v584_v36 }
  0xf0   : > { %v596_v40 = vadd.f32 %v2028_v38, %v2385_v34  ;;  %v2060_v41 = vpop.f32.mrb[2].mxu1  ;;  %v587_v42 = vpop.f32.mrb[3].mxu0  ;;  %v713_v48 = vadd.f32 %v2385_v34, %v712_v37 }
  0xf1   : > { %v724_v45 = vadd.f32 %v2060_v41, %v2385_v34  ;;  %v588_v46 = vadd.f32 %v2385_v34, %v587_v42  ;;  %v715_v47 = vpop.f32.mrb[3].mxu1 }
  0xf2   : > { %v840_v49 = vpack.c.bf16 %v596_v40, %v593_v39  ;;  %v716_v50 = vadd.f32 %v2385_v34, %v715_v47 }
  0xf3   : > { %v856_v51 = vpack.c.bf16 %v724_v45, %v721_v43  ;;  %v839_v52 = vpack.c.bf16 %v588_v46, %v585_v44 }
  0xf4   : > { %1959 = vst [vmem:[%s2397_s12 + $0x8] sm:$0xff] %v840_v49   ;;  %v2400_v53 = vpack.c.bf16 %v716_v50, %v713_v48  ;;  %v1161_v54 = vunpack.c.l.bf16 %v840_v49  ;;  %v1162_v60 = vunpack.c.h.bf16 %v840_v49 }
  0xf5   : > { %1975 = vst [vmem:[%s2397_s12 + $0x88] sm:$0xff] %v856_v51   ;;  %1803 = vst [vmem:[%s2397_s12] sm:$0xff] %v839_v52   ;;  %v1193_v55 = vunpack.c.l.bf16 %v856_v51  ;;  %v2031_v56 = vpop.f32.mrb[4].mxu0  ;;  %v1159_v1 = vunpack.c.l.bf16 %v839_v52  ;;  %v1194_v13 = vunpack.c.h.bf16 %v856_v51  ;;  %v1160_v18 = vunpack.c.h.bf16 %v839_v52 }
  0xf6   : > { %1974 = vst [vmem:[%s2397_s12 + $0x80] sm:$0xff] %v2400_v53   ;;  %v1225_v57 = vmul.f32 %v1161_v54, %v1161_v54  ;;  %v609_v58 = vadd.f32 %v2031_v56, %v2385_v34  ;;  %v600_v59 = vpop.f32.mrb[5].mxu0  ;;  %v2063_v61 = vpop.f32.mrb[4].mxu1  ;;  %v1226_v11 = vmul.f32 %v1162_v60, %v1162_v60  ;;  %v1192_v22 = vunpack.c.h.bf16 %v2400_v53 }
  0xf7   : > { %v1257_v62 = vmul.f32 %v1193_v55, %v1193_v55  ;;  %v601_v63 = vadd.f32 %v2385_v34, %v600_v59  ;;  %v2032_v0 = vpop.f32.mrb[6].mxu0  ;;  %v737_v2 = vadd.f32 %v2063_v61, %v2385_v34  ;;  %v728_v3 = vpop.f32.mrb[5].mxu1  ;;  %v1223_v15 = vmul.f32 %v1159_v1, %v1159_v1 }
  0xf8   : > { %1291 = vadd.xlane.f32.xlu1 %v1225_v57  ;;  %v612_v4 = vadd.f32 %v2032_v0, %v2385_v34  ;;  %v603_v5 = vpop.f32.mrb[7].mxu0  ;;  %v729_v6 = vadd.f32 %v2385_v34, %v728_v3  ;;  %v2064_v7 = vpop.f32.mrb[6].mxu1  ;;  %v1258_v21 = vmul.f32 %v1194_v13, %v1194_v13  ;;  %v1224_v26 = vmul.f32 %v1160_v18, %v1160_v18 }
  0xf9   : > { %1355 = vadd.xlane.f32.xlu0 %v1257_v62  ;;  %v604_v8 = vadd.f32 %v2385_v34, %v603_v5  ;;  %v740_v9 = vadd.f32 %v2064_v7, %v2385_v34  ;;  %v731_v10 = vpop.f32.mrb[7].mxu1  ;;  %v1191_v27 = vunpack.c.l.bf16 %v2400_v53  ;;  %v1256_v40 = vmul.f32 %v1192_v22, %v1192_v22 }
  0xfa   : > { %v842_v12 = vpack.c.bf16 %v612_v4, %v609_v58  ;;  %v732_v14 = vadd.f32 %v2385_v34, %v731_v10 }
  0xfb   : > { %v2414_v16 = vpack.c.bf16 %v604_v8, %v601_v63  ;;  %v2416_v17 = vpack.c.bf16 %v740_v9, %v737_v2  ;;  %v1255_v44 = vmul.f32 %v1191_v27, %v1191_v27 }
  0xfc   : > { %1293 = vadd.xlane.f32.xlu1 %v1226_v11  ;;  %1961 = vst [vmem:[%s2397_s12 + $0x18] sm:$0xff] %v842_v12   ;;  %v2419_v19 = vpack.c.bf16 %v732_v14, %v729_v6  ;;  %v1166_v41 = vunpack.c.h.bf16 %v842_v12  ;;  %v1165_v45 = vunpack.c.l.bf16 %v842_v12 }
  0xfd   : > { %1287 = vadd.xlane.f32.xlu0 %v1223_v15  ;;  %1960 = vst [vmem:[%s2397_s12 + $0x10] sm:$0xff] %v2414_v16   ;;  %1977 = vst [vmem:[%s2397_s12 + $0x98] sm:$0xff] %v2416_v17   ;;  %v2035_v20 = vpop.f32.mrb[8].mxu0  ;;  %v1198_v51 = vunpack.c.h.bf16 %v2416_v17  ;;  %v1197_v56 = vunpack.c.l.bf16 %v2416_v17  ;;  %v1164_v5 = vunpack.c.h.bf16 %v2414_v16  ;;  %v1163_v9 = vunpack.c.l.bf16 %v2414_v16 }
  0xfe   : > { %1976 = vst [vmem:[%s2397_s12 + $0x90] sm:$0xff] %v2419_v19   ;;  %v625_v23 = vadd.f32 %v2035_v20, %v2385_v34  ;;  %v616_v24 = vpop.f32.mrb[9].mxu0  ;;  %v2067_v25 = vpop.f32.mrb[8].mxu1  ;;  %v1230_v50 = vmul.f32 %v1166_v41, %v1166_v41  ;;  %v1229_v55 = vmul.f32 %v1165_v45, %v1165_v45  ;;  %v1196_v15 = vunpack.c.h.bf16 %v2419_v19 }
  0xff   : > { %v617_v28 = vadd.f32 %v2385_v34, %v616_v24  ;;  %v2036_v29 = vpop.f32.mrb[10].mxu0  ;;  %v753_v30 = vadd.f32 %v2067_v25, %v2385_v34  ;;  %v744_v31 = vpop.f32.mrb[9].mxu1  ;;  %v1262_v4 = vmul.f32 %v1198_v51, %v1198_v51  ;;  %v1261_v8 = vmul.f32 %v1197_v56, %v1197_v56 }
 0x100   : > { %1357 = vadd.xlane.f32.xlu1 %v1258_v21  ;;  %v628_v32 = vadd.f32 %v2036_v29, %v2385_v34  ;;  %v619_v33 = vpop.f32.mrb[11].mxu0  ;;  %v745_v35 = vadd.f32 %v2385_v34, %v744_v31  ;;  %v2068_v36 = vpop.f32.mrb[10].mxu1  ;;  %v1228_v14 = vmul.f32 %v1164_v5, %v1164_v5  ;;  %v1227_v20 = vmul.f32 %v1163_v9, %v1163_v9 }
 0x101   : > { %1289 = vadd.xlane.f32.xlu0 %v1224_v26  ;;  %v620_v37 = vadd.f32 %v2385_v34, %v619_v33  ;;  %v756_v38 = vadd.f32 %v2068_v36, %v2385_v34  ;;  %v747_v39 = vpop.f32.mrb[11].mxu1  ;;  %v1195_v21 = vunpack.c.l.bf16 %v2419_v19 }
 0x102   : > { %v2436_v42 = vpack.c.bf16 %v628_v32, %v625_v23  ;;  %v748_v43 = vadd.f32 %v2385_v34, %v747_v39  ;;  %v1260_v32 = vmul.f32 %v1196_v15, %v1196_v15 }
 0x103   : > { %v2439_v46 = vpack.c.bf16 %v620_v37, %v617_v28  ;;  %v2441_v47 = vpack.c.bf16 %v756_v38, %v753_v30  ;;  %v1259_v37 = vmul.f32 %v1195_v21, %v1195_v21 }
 0x104   : > { %1353 = vadd.xlane.f32.xlu1 %v1256_v40  ;;  %1963 = vst [vmem:[%s2397_s12 + $0x28] sm:$0xff] %v2436_v42   ;;  %v2445_v48 = vpack.c.bf16 %v748_v43, %v745_v35  ;;  %v1170_v33 = vunpack.c.h.bf16 %v2436_v42  ;;  %v1169_v38 = vunpack.c.l.bf16 %v2436_v42 }
 0x105   : > { %1351 = vadd.xlane.f32.xlu0 %v1255_v44  ;;  %1962 = vst [vmem:[%s2397_s12 + $0x20] sm:$0xff] %v2439_v46   ;;  %1979 = vst [vmem:[%s2397_s12 + $0xa8] sm:$0xff] %v2441_v47   ;;  %v2039_v49 = vpop.f32.mrb[12].mxu0  ;;  %v1202_v45 = vunpack.c.h.bf16 %v2441_v47 }
 0x106   : > { %1978 = vst [vmem:[%s2397_s12 + $0xa0] sm:$0xff] %v2445_v48   ;;  %v641_v52 = vadd.f32 %v2039_v49, %v2385_v34  ;;  %v632_v53 = vpop.f32.mrb[13].mxu0  ;;  %v2071_v54 = vpop.f32.mrb[12].mxu1  ;;  %v1234_v44 = vmul.f32 %v1170_v33, %v1170_v33  ;;  %v1233_v51 = vmul.f32 %v1169_v38, %v1169_v38 }
 0x107   : > { %v633_v57 = vadd.f32 %v2385_v34, %v632_v53  ;;  %v2040_v58 = vpop.f32.mrb[14].mxu0  ;;  %v769_v59 = vadd.f32 %v2071_v54, %v2385_v34  ;;  %v760_v60 = vpop.f32.mrb[13].mxu1 }
 0x108   : > { %1301 = vadd.xlane.f32.xlu1 %v1230_v50  ;;  %v644_v61 = vadd.f32 %v2040_v58, %v2385_v34  ;;  %v635_v62 = vpop.f32.mrb[15].mxu0  ;;  %v761_v63 = vadd.f32 %v2385_v34, %v760_v60  ;;  %v2072_v0 = vpop.f32.mrb[14].mxu1 }
 0x109   : > { %1299 = vadd.xlane.f32.xlu0 %v1229_v55  ;;  %v636_v1 = vadd.f32 %v2385_v34, %v635_v62  ;;  %v772_v2 = vadd.f32 %v2072_v0, %v2385_v34  ;;  %v763_v3 = vpop.f32.mrb[15].mxu1  ;;  %v1168_v0 = vunpack.c.h.bf16 %v2439_v46 }
 0x10a   : > { %v2463_v6 = vpack.c.bf16 %v644_v61, %v641_v52  ;;  %v764_v7 = vadd.f32 %v2385_v34, %v763_v3  ;;  %v1201_v52 = vunpack.c.l.bf16 %v2441_v47 }
 0x10b   : > { %v2467_v10 = vpack.c.bf16 %v636_v1, %v633_v57  ;;  %v2469_v11 = vpack.c.bf16 %v772_v2, %v769_v59 }
 0x10c   : > { %1365 = vadd.xlane.f32.xlu1 %v1262_v4  ;;  %1965 = vst [vmem:[%s2397_s12 + $0x38] sm:$0xff] %v2463_v6   ;;  %v2473_v12 = vpack.c.bf16 %v764_v7, %v761_v63  ;;  %v1266_v63 = vmul.f32 %v1202_v45, %v1202_v45  ;;  %v1265_v3 = vmul.f32 %v1201_v52, %v1201_v52  ;;  %v1167_v4 = vunpack.c.l.bf16 %v2439_v46 }
 0x10d   : > { %1363 = vadd.xlane.f32.xlu0 %v1261_v8  ;;  %1964 = vst [vmem:[%s2397_s12 + $0x30] sm:$0xff] %v2467_v10   ;;  %1981 = vst [vmem:[%s2397_s12 + $0xb8] sm:$0xff] %v2469_v11   ;;  %v2043_v13 = vpop.f32.mrb[16].mxu0  ;;  %v1205_v52 = vunpack.c.l.bf16 %v2469_v11 }
 0x10e   : > { %1980 = vst [vmem:[%s2397_s12 + $0xb0] sm:$0xff] %v2473_v12   ;;  %v657_v16 = vadd.f32 %v2043_v13, %v2385_v34  ;;  %v648_v17 = vpop.f32.mrb[17].mxu0  ;;  %v2075_v18 = vpop.f32.mrb[16].mxu1  ;;  %v1232_v13 = vmul.f32 %v1168_v0, %v1168_v0 }
 0x10f   : > { %v649_v22 = vadd.f32 %v2385_v34, %v648_v17  ;;  %v2044_v23 = vpop.f32.mrb[18].mxu0  ;;  %v785_v24 = vadd.f32 %v2075_v18, %v2385_v34  ;;  %v776_v25 = vpop.f32.mrb[17].mxu1  ;;  %v1231_v17 = vmul.f32 %v1167_v4, %v1167_v4  ;;  %v1199_v18 = vunpack.c.l.bf16 %v2445_v48 }
 0x110   : > { %1297 = vadd.xlane.f32.xlu1 %v1228_v14  ;;  %v660_v26 = vadd.f32 %v2044_v23, %v2385_v34  ;;  %v651_v27 = vpop.f32.mrb[19].mxu0  ;;  %v777_v28 = vadd.f32 %v2385_v34, %v776_v25  ;;  %v2076_v29 = vpop.f32.mrb[18].mxu1  ;;  %v1200_v14 = vunpack.c.h.bf16 %v2445_v48  ;;  %v1171_v4 = vunpack.c.l.bf16 %v2467_v10 }
 0x111   : > { %1295 = vadd.xlane.f32.xlu0 %v1227_v20  ;;  %v652_v30 = vadd.f32 %v2385_v34, %v651_v27  ;;  %v788_v19 = vadd.f32 %v2076_v29, %v2385_v34  ;;  %v779_v31 = vpop.f32.mrb[19].mxu1  ;;  %v1263_v33 = vmul.f32 %v1199_v18, %v1199_v18 }
 0x112   : > { %v2491_v35 = vpack.c.bf16 %v660_v26, %v657_v16  ;;  %v780_v36 = vadd.f32 %v2385_v34, %v779_v31 }
 0x113   : > { %v2495_v39 = vpack.c.bf16 %v652_v30, %v649_v22  ;;  %v2497_v40 = vpack.c.bf16 %v788_v19, %v785_v24  ;;  %v1264_v30 = vmul.f32 %v1200_v14, %v1200_v14  ;;  %v1174_v19 = vunpack.c.h.bf16 %v2463_v6 }
 0x114   : > { %1361 = vadd.xlane.f32.xlu1 %v1260_v32  ;;  %1967 = vst [vmem:[%s2397_s12 + $0x48] sm:$0xff] %v2491_v35   ;;  %v2501_v41 = vpack.c.bf16 %v780_v36, %v777_v28  ;;  %v1173_v36 = vunpack.c.l.bf16 %v2463_v6 }
 0x115   : > { %1359 = vadd.xlane.f32.xlu0 %v1259_v37  ;;  %1966 = vst [vmem:[%s2397_s12 + $0x40] sm:$0xff] %v2495_v39   ;;  %1983 = vst [vmem:[%s2397_s12 + $0xc8] sm:$0xff] %v2497_v40   ;;  %v2047_v43 = vpop.f32.mrb[20].mxu0  ;;  %v1238_v45 = vmul.f32 %v1174_v19, %v1174_v19 }
 0x116   : > { %1982 = vst [vmem:[%s2397_s12 + $0xc0] sm:$0xff] %v2501_v41   ;;  %v673_v42 = vadd.f32 %v2047_v43, %v2385_v34  ;;  %v664_v49 = vpop.f32.mrb[21].mxu0  ;;  %v2079_v50 = vpop.f32.mrb[20].mxu1 }
 0x117   : > { %v665_v53 = vadd.f32 %v2385_v34, %v664_v49  ;;  %v2048_v54 = vpop.f32.mrb[22].mxu0  ;;  %v801_v55 = vadd.f32 %v2079_v50, %v2385_v34  ;;  %v792_v56 = vpop.f32.mrb[21].mxu1 }
 0x118   : > { %1309 = vadd.xlane.f32.xlu1 %v1234_v44  ;;  %v676_v57 = vadd.f32 %v2048_v54, %v2385_v34  ;;  %v667_v58 = vpop.f32.mrb[23].mxu0  ;;  %v793_v59 = vadd.f32 %v2385_v34, %v792_v56  ;;  %v2080_v60 = vpop.f32.mrb[22].mxu1 }
 0x119   : > { %1307 = vadd.xlane.f32.xlu0 %v1233_v51  ;;  %v668_v61 = vadd.f32 %v2385_v34, %v667_v58  ;;  %v804_v47 = vadd.f32 %v2080_v60, %v2385_v34  ;;  %v795_v62 = vpop.f32.mrb[23].mxu1  ;;  %v1237_v51 = vmul.f32 %v1173_v36, %v1173_v36 }
 0x11a   : > { %v2519_v1 = vpack.c.bf16 %v676_v57, %v673_v42  ;;  %v796_v2 = vadd.f32 %v2385_v34, %v795_v62  ;;  %v1206_v42 = vunpack.c.h.bf16 %v2469_v11 }
 0x11b   : > { %v2523_v5 = vpack.c.bf16 %v668_v61, %v665_v53  ;;  %v2525_v7 = vpack.c.bf16 %v804_v47, %v801_v55 }
 0x11c   : > { %1373 = vadd.xlane.f32.xlu1 %v1266_v63  ;;  %1969 = vst [vmem:[%s2397_s12 + $0x58] sm:$0xff] %v2519_v1   ;;  %v2529_v8 = vpack.c.bf16 %v796_v2, %v793_v59  ;;  %v1270_v62 = vmul.f32 %v1206_v42, %v1206_v42  ;;  %v1172_v63 = vunpack.c.h.bf16 %v2467_v10  ;;  %v1235_v10 = vmul.f32 %v1171_v4, %v1171_v4 }
 0x11d   : > { %1371 = vadd.xlane.f32.xlu0 %v1265_v3  ;;  %1968 = vst [vmem:[%s2397_s12 + $0x50] sm:$0xff] %v2523_v5   ;;  %1985 = vst [vmem:[%s2397_s12 + $0xd8] sm:$0xff] %v2525_v7   ;;  %v2051_v9 = vpop.f32.mrb[24].mxu0  ;;  %v1269_v3 = vmul.f32 %v1205_v52, %v1205_v52 }
 0x11e   : > { %1984 = vst [vmem:[%s2397_s12 + $0xd0] sm:$0xff] %v2529_v8   ;;  %v689_v46 = vadd.f32 %v2051_v9, %v2385_v34  ;;  %v680_v15 = vpop.f32.mrb[25].mxu0  ;;  %v2083_v16 = vpop.f32.mrb[24].mxu1 }
 0x11f   : > { %v681_v20 = vadd.f32 %v2385_v34, %v680_v15  ;;  %v2052_v21 = vpop.f32.mrb[26].mxu0  ;;  %v817_v22 = vadd.f32 %v2083_v16, %v2385_v34  ;;  %v808_v23 = vpop.f32.mrb[25].mxu1  ;;  %v1203_v15 = vunpack.c.l.bf16 %v2473_v12 }
 0x120   : > { %1305 = vadd.xlane.f32.xlu1 %v1232_v13  ;;  %v692_v24 = vadd.f32 %v2052_v21, %v2385_v34  ;;  %v683_v25 = vpop.f32.mrb[27].mxu0  ;;  %v809_v26 = vadd.f32 %v2385_v34, %v808_v23  ;;  %v2084_v27 = vpop.f32.mrb[26].mxu1 }
 0x121   : > { %1303 = vadd.xlane.f32.xlu0 %v1231_v17  ;;  %v684_v28 = vadd.f32 %v2385_v34, %v683_v25  ;;  %v820_v48 = vadd.f32 %v2084_v27, %v2385_v34  ;;  %v811_v29 = vpop.f32.mrb[27].mxu1  ;;  %v1178_v17 = vunpack.c.h.bf16 %v2491_v35  ;;  %v1267_v18 = vmul.f32 %v1203_v15, %v1203_v15 }
 0x122   : > { %v2547_v31 = vpack.c.bf16 %v692_v24, %v689_v46  ;;  %v812_v32 = vadd.f32 %v2385_v34, %v811_v29  ;;  %v1236_v46 = vmul.f32 %v1172_v63, %v1172_v63  ;;  %v1209_v24 = vunpack.c.l.bf16 %v2497_v40 }
 0x123   : > { %v2551_v37 = vpack.c.bf16 %v684_v28, %v681_v20  ;;  %v2553_v38 = vpack.c.bf16 %v820_v48, %v817_v22  ;;  %v1177_v20 = vunpack.c.l.bf16 %v2491_v35  ;;  %v1242_v21 = vmul.f32 %v1178_v17, %v1178_v17 }
 0x124   : > { %1369 = vadd.xlane.f32.xlu1 %v1264_v30  ;;  %1971 = vst [vmem:[%s2397_s12 + $0x68] sm:$0xff] %v2547_v31   ;;  %v2557_v43 = vpack.c.bf16 %v812_v32, %v809_v26  ;;  %v1210_v22 = vunpack.c.h.bf16 %v2497_v40  ;;  %v1273_v26 = vmul.f32 %v1209_v24, %v1209_v24  ;;  %v1175_v27 = vunpack.c.l.bf16 %v2495_v39 }
 0x125   : > { %1367 = vadd.xlane.f32.xlu0 %v1263_v33  ;;  %1970 = vst [vmem:[%s2397_s12 + $0x60] sm:$0xff] %v2551_v37   ;;  %1987 = vst [vmem:[%s2397_s12 + $0xe8] sm:$0xff] %v2553_v38   ;;  %v2055_v44 = vpop.f32.mrb[28].mxu0  ;;  %v1241_v23 = vmul.f32 %v1177_v20, %v1177_v20  ;;  %v1208_v35 = vunpack.c.h.bf16 %v2501_v41  ;;  %v1207_v29 = vunpack.c.l.bf16 %v2501_v41  ;;  %v1182_v40 = vunpack.c.h.bf16 %v2519_v1 }
 0x126   : > { %1986 = vst [vmem:[%s2397_s12 + $0xe0] sm:$0xff] %v2557_v43   ;;  %v705_v6 = vadd.f32 %v2055_v44, %v2385_v34  ;;  %v696_v49 = vpop.f32.mrb[29].mxu0  ;;  %v2087_v50 = vpop.f32.mrb[28].mxu1  ;;  %v1274_v25 = vmul.f32 %v1210_v22, %v1210_v22  ;;  %v1239_v48 = vmul.f32 %v1175_v27, %v1175_v27  ;;  %v1181_v32 = vunpack.c.l.bf16 %v2519_v1 }
 0x127   : > { %v697_v53 = vadd.f32 %v2385_v34, %v696_v49  ;;  %v2056_v54 = vpop.f32.mrb[30].mxu0  ;;  %v824_v55 = vpop.f32.mrb[29].mxu1  ;;  %v833_v58 = vadd.f32 %v2087_v50, %v2385_v34  ;;  %v1272_v30 = vmul.f32 %v1208_v35, %v1208_v35  ;;  %v1271_v19 = vmul.f32 %v1207_v29, %v1207_v29 }
 0x128   : > { %1317 = vadd.xlane.f32.xlu1 %v1238_v45  ;;  %v708_v56 = vadd.f32 %v2056_v54, %v2385_v34  ;;  %v699_v57 = vpop.f32.mrb[31].mxu0  ;;  %v825_v59 = vadd.f32 %v2385_v34, %v824_v55  ;;  %v2088_v60 = vpop.f32.mrb[30].mxu1  ;;  %v1246_v33 = vmul.f32 %v1182_v40, %v1182_v40  ;;  %v1245_v36 = vmul.f32 %v1181_v32, %v1181_v32 }
 0x129   : > { %1315 = vadd.xlane.f32.xlu0 %v1237_v51  ;;  %v700_v61 = vadd.f32 %v2385_v34, %v699_v57  ;;  %v836_v11 = vadd.f32 %v2088_v60, %v2385_v34  ;;  %v827_v47 = vpop.f32.mrb[31].mxu1  ;;  %v1213_v44 = vunpack.c.l.bf16 %v2525_v7  ;;  %v1180_v41 = vunpack.c.h.bf16 %v2523_v5 }
 0x12a   : > { %v2575_v0 = vpack.c.bf16 %v708_v56, %v705_v6  ;;  %v828_v2 = vadd.f32 %v2385_v34, %v827_v47  ;;  %v1204_v34 = vunpack.c.h.bf16 %v2473_v12  ;;  %v1176_v12 = vunpack.c.h.bf16 %v2495_v39 }
 0x12b   : > { %v2579_v9 = vpack.c.bf16 %v700_v61, %v697_v53  ;;  %v2581_v13 = vpack.c.bf16 %v836_v11, %v833_v58  ;;  %v1214_v39 = vunpack.c.h.bf16 %v2525_v7  ;;  %v1277_v42 = vmul.f32 %v1213_v44, %v1213_v44 }
 0x12c   : > { %1381 = vadd.xlane.f32.xlu1 %v1270_v62  ;;  %1973 = vst [vmem:[%s2397_s12 + $0x78] sm:$0xff] %v2575_v0   ;;  %v2585_v14 = vpack.c.bf16 %v828_v2, %v825_v59  ;;  %v1268_v16 = vmul.f32 %v1204_v34, %v1204_v34  ;;  %v1240_v28 = vmul.f32 %v1176_v12, %v1176_v12  ;;  %v1179_v6 = vunpack.c.l.bf16 %v2523_v5 }
 0x12d   : > { %1379 = vadd.xlane.f32.xlu0 %v1269_v3  ;;  %1972 = vst [vmem:[%s2397_s12 + $0x70] sm:$0xff] %v2579_v9   ;;  %1989 = vst [vmem:[%s2397_s12 + $0xf8] sm:$0xff] %v2581_v13   ;;  %v1278_v45 = vmul.f32 %v1214_v39, %v1214_v39  ;;  %v1244_v49 = vmul.f32 %v1180_v41, %v1180_v41  ;;  %v1212_v1 = vunpack.c.h.bf16 %v2529_v8  ;;  %v1211_v51 = vunpack.c.l.bf16 %v2529_v8 }
 0x12e   : > { %1988 = vst [vmem:[%s2397_s12 + $0xf0] sm:$0xff] %v2585_v14   ;;  %v1243_v50 = vmul.f32 %v1179_v6, %v1179_v6  ;;  %v1186_v7 = vunpack.c.h.bf16 %v2547_v31  ;;  %v1185_v54 = vunpack.c.l.bf16 %v2547_v31  ;;  %v1218_v5 = vunpack.c.h.bf16 %v2553_v38 }
 0x12f   : > { %v1276_v52 = vmul.f32 %v1212_v1, %v1212_v1  ;;  %v1275_v53 = vmul.f32 %v1211_v51, %v1211_v51  ;;  %v1217_v57 = vunpack.c.l.bf16 %v2553_v38  ;;  %v1184_v8 = vunpack.c.h.bf16 %v2551_v37 }
 0x130   : > { %1313 = vadd.xlane.f32.xlu1 %v1236_v46  ;;  %v1250_v55 = vmul.f32 %v1186_v7, %v1186_v7  ;;  %v1249_v56 = vmul.f32 %v1185_v54, %v1185_v54  ;;  %v1282_v58 = vmul.f32 %v1218_v5, %v1218_v5  ;;  %v1183_v60 = vunpack.c.l.bf16 %v2551_v37 }
 0x131   : > { %1311 = vadd.xlane.f32.xlu0 %v1235_v10  ;;  %v1281_v59 = vmul.f32 %v1217_v57, %v1217_v57  ;;  %v1248_v61 = vmul.f32 %v1184_v8, %v1184_v8  ;;  %v1216_v31 = vunpack.c.h.bf16 %v2557_v43  ;;  %v1215_v47 = vunpack.c.l.bf16 %v2557_v43 }
 0x132   : > { %v1247_v11 = vmul.f32 %v1183_v60, %v1183_v60  ;;  %v1190_v38 = vunpack.c.h.bf16 %v2575_v0  ;;  %v1189_v2 = vunpack.c.l.bf16 %v2575_v0  ;;  %v1188_v37 = vunpack.c.h.bf16 %v2579_v9 }
 0x133   : > { %v1280_v62 = vmul.f32 %v1216_v31, %v1216_v31  ;;  %v1279_v63 = vmul.f32 %v1215_v47, %v1215_v47  ;;  %v1187_v46 = vunpack.c.l.bf16 %v2579_v9  ;;  %v1220_v43 = vunpack.c.h.bf16 %v2585_v14 }
 0x134   : > { %1377 = vadd.xlane.f32.xlu1 %v1268_v16  ;;  %v1254_v3 = vmul.f32 %v1190_v38, %v1190_v38  ;;  %v1253_v4 = vmul.f32 %v1189_v2, %v1189_v2  ;;  %v1252_v34 = vmul.f32 %v1188_v37, %v1188_v37  ;;  %v1219_v15 = vunpack.c.l.bf16 %v2585_v14 }
 0x135   : > { %1375 = vadd.xlane.f32.xlu0 %v1267_v18  ;;  %v1251_v10 = vmul.f32 %v1187_v46, %v1187_v46  ;;  %v1284_v0 = vmul.f32 %v1220_v43, %v1220_v43  ;;  %v1222_v16 = vunpack.c.h.bf16 %v2581_v13  ;;  %v1221_v18 = vunpack.c.l.bf16 %v2581_v13 }
 0x136   : > { %v1283_v17 = vmul.f32 %v1219_v15, %v1219_v15 }
 0x137   : > { %v1286_v9 = vmul.f32 %v1222_v16, %v1222_v16  ;;  %v1285_v20 = vmul.f32 %v1221_v18, %v1221_v18 }
 0x138   : > { %1325 = vadd.xlane.f32.xlu1 %v1242_v21 }
 0x139   : > { %1323 = vadd.xlane.f32.xlu0 %v1241_v23 }
 0x13c   : > { %1389 = vadd.xlane.f32.xlu1 %v1274_v25 }
 0x13d   : > { %1387 = vadd.xlane.f32.xlu0 %v1273_v26 }
 0x140   : > { %1321 = vadd.xlane.f32.xlu1 %v1240_v28 }
 0x141   : > { %1319 = vadd.xlane.f32.xlu0 %v1239_v48 }
 0x144   : > { %1385 = vadd.xlane.f32.xlu1 %v1272_v30 }
 0x145   : > { %1383 = vadd.xlane.f32.xlu0 %v1271_v19 }
 0x148   : > { %1333 = vadd.xlane.f32.xlu1 %v1246_v33 }
 0x149   : > { %1331 = vadd.xlane.f32.xlu0 %v1245_v36 }
 0x14c   : > { %1397 = vadd.xlane.f32.xlu1 %v1278_v45 }
 0x14d   : > { %1395 = vadd.xlane.f32.xlu0 %v1277_v42 }
 0x150   : > { %1329 = vadd.xlane.f32.xlu1 %v1244_v49 }
 0x151   : > { %1327 = vadd.xlane.f32.xlu0 %v1243_v50 }
 0x154   : > { %1393 = vadd.xlane.f32.xlu1 %v1276_v52 }
 0x155   : > { %1391 = vadd.xlane.f32.xlu0 %v1275_v53 }
 0x158   : > { %1341 = vadd.xlane.f32.xlu1 %v1250_v55 }
 0x159   : > { %1339 = vadd.xlane.f32.xlu0 %v1249_v56 }
 0x15c   : > { %1405 = vadd.xlane.f32.xlu1 %v1282_v58 }
 0x15d   : > { %1403 = vadd.xlane.f32.xlu0 %v1281_v59 }
 0x160   : > { %1337 = vadd.xlane.f32.xlu1 %v1248_v61 }
 0x161   : > { %1335 = vadd.xlane.f32.xlu0 %v1247_v11 }
 0x164   : > { %1401 = vadd.xlane.f32.xlu1 %v1280_v62 }
 0x165   : > { %1399 = vadd.xlane.f32.xlu0 %v1279_v63 }
 0x168   : > { %1349 = vadd.xlane.f32.xlu1 %v1254_v3 }
 0x169   : > { %1347 = vadd.xlane.f32.xlu0 %v1253_v4 }
 0x16c   : > { %1345 = vadd.xlane.f32.xlu1 %v1252_v34 }
 0x16d   : > { %1343 = vadd.xlane.f32.xlu0 %v1251_v10 }
 0x170   : > { %1409 = vadd.xlane.f32.xlu1 %v1284_v0 }
 0x171   : > { %1407 = vadd.xlane.f32.xlu0 %v1283_v17 }
 0x174   : > { %1413 = vadd.xlane.f32.xlu1 %v1286_v9 }
 0x175   : > { %1411 = vadd.xlane.f32.xlu0 %v1285_v20 }
 0x185   : > { %v1292_v13 = vpop.xlane.xlu1 %1291 }
 0x186   : > { %v1356_v14 = vpop.xlane.xlu0 %1355  ;;  %1418 = vst.msk [vmem:[%s2631_s22 + $0x10] sm:$0xff] %vm1415_vm1, %v1292_v13 }
 0x187   : > { %1450 = vst.msk [vmem:[%s2631_s22 + $0x110] sm:$0xff] %vm1415_vm1, %v1356_v14 }
 0x188   : > { %2178 = shalt.err (!%p2175_p3)
}
 0x189   : > { %s2179_s8 = scalar_lea.hbm %s2637_s30, 4096  ;;  %s2183_s12 = scalar_lea.hbm %s2816_s3, 8192 }
 0x18a   : > { %p2180_p4 = scmp.ne.s32.totalorder %s2637_s30, %s2179_s8  ;;  %p2184_p9 = scmp.lt.u32.totalorder %s2637_s30, %s2816_s3 }
 0x18b   : > { %p2185_p10 = scmp.lt.u32.totalorder %s2183_s12, %s2179_s8  ;;  %p2187_p12 = scmp.lt.u32.totalorder %s2179_s8, %s2637_s30 }
 0x18c   : > { %p2181_p7 = pnand %p2180_p4, %p2295_p5 }
 0x18d   : > { %p2186_p11 = por %p2185_p10, %p2184_p9 }
 0x18e   : > { %p2182_p8 = pneg %p2181_p7 }
 0x18f   : > { %p2188_p13 = por %p2187_p12, %p2186_p11 }
 0x191   : > { %p2189_p0 = pnand %p2188_p13, %p2182_p8 }
 0x193   : > { %2192 = shalt.err (!%p2189_p0)
}
 0x194   : > { %s2230_s20 = smov 64   ;;  %s2231_s23 = smov 4   ;;  %v1294_v21 = vpop.xlane.xlu1 %1293  ;;  %v1288_v22 = vpop.xlane.xlu0 %1287 }
 0x195   : > { %2091 = dma.vmem_to_hbm [thread:$0]  (%p2295_p5), %s2640_s5, 4096, %s2637_s30, %s2648_s29, %s2230_s20, %s2230_s20, %s2231_s23  }
 0x196   : > { %1419 = vst.msk [vmem:[%s2631_s22 + $0x18] sm:$0xff] %vm1415_vm1, %v1294_v21  ;;  %1416 = vst.msk [vmem:[%s2631_s22] sm:$0xff] %vm1415_vm1, %v1288_v22 }
 0x198   : > { %v1358_v23 = vpop.xlane.xlu1 %1357  ;;  %v1290_v24 = vpop.xlane.xlu0 %1289 }
 0x199   : > { %1451 = vst.msk [vmem:[%s2631_s22 + $0x118] sm:$0xff] %vm1415_vm1, %v1358_v23  ;;  %1417 = vst.msk [vmem:[%s2631_s22 + $0x8] sm:$0xff] %vm1415_vm1, %v1290_v24 }
 0x19c   : > { %v1354_v25 = vpop.xlane.xlu1 %1353  ;;  %v1352_v12 = vpop.xlane.xlu0 %1351 }
 0x19d   : > { %1449 = vst.msk [vmem:[%s2631_s22 + $0x108] sm:$0xff] %vm1415_vm1, %v1354_v25  ;;  %1448 = vst.msk [vmem:[%s2631_s22 + $0x100] sm:$0xff] %vm1415_vm1, %v1352_v12 }
 0x1a0   : > { %v1302_v26 = vpop.xlane.xlu1 %1301  ;;  %v1300_v27 = vpop.xlane.xlu0 %1299 }
 0x1a1   : > { %1423 = vst.msk [vmem:[%s2631_s22 + $0x38] sm:$0xff] %vm1415_vm1, %v1302_v26  ;;  %1422 = vst.msk [vmem:[%s2631_s22 + $0x30] sm:$0xff] %vm1415_vm1, %v1300_v27 }
 0x1a4   : > { %v1366_v28 = vpop.xlane.xlu1 %1365  ;;  %v1364_v35 = vpop.xlane.xlu0 %1363 }
 0x1a5   : > { %1455 = vst.msk [vmem:[%s2631_s22 + $0x138] sm:$0xff] %vm1415_vm1, %v1366_v28  ;;  %1454 = vst.msk [vmem:[%s2631_s22 + $0x130] sm:$0xff] %vm1415_vm1, %v1364_v35 }
 0x1a8   : > { %v1298_v48 = vpop.xlane.xlu1 %1297  ;;  %v1296_v29 = vpop.xlane.xlu0 %1295 }
 0x1a9   : > { %1421 = vst.msk [vmem:[%s2631_s22 + $0x28] sm:$0xff] %vm1415_vm1, %v1298_v48  ;;  %1420 = vst.msk [vmem:[%s2631_s22 + $0x20] sm:$0xff] %vm1415_vm1, %v1296_v29 }
 0x1ac   : > { %v1362_v30 = vpop.xlane.xlu1 %1361  ;;  %v1360_v40 = vpop.xlane.xlu0 %1359 }
 0x1ad   : > { %1453 = vst.msk [vmem:[%s2631_s22 + $0x128] sm:$0xff] %vm1415_vm1, %v1362_v30  ;;  %1452 = vst.msk [vmem:[%s2631_s22 + $0x120] sm:$0xff] %vm1415_vm1, %v1360_v40 }
 0x1b0   : > { %v1310_v19 = vpop.xlane.xlu1 %1309  ;;  %v1308_v32 = vpop.xlane.xlu0 %1307 }
 0x1b1   : > { %1427 = vst.msk [vmem:[%s2631_s22 + $0x58] sm:$0xff] %vm1415_vm1, %v1310_v19  ;;  %1426 = vst.msk [vmem:[%s2631_s22 + $0x50] sm:$0xff] %vm1415_vm1, %v1308_v32 }
 0x1b4   : > { %v1374_v33 = vpop.xlane.xlu1 %1373  ;;  %v1372_v39 = vpop.xlane.xlu0 %1371 }
 0x1b5   : > { %1459 = vst.msk [vmem:[%s2631_s22 + $0x158] sm:$0xff] %vm1415_vm1, %v1374_v33  ;;  %1458 = vst.msk [vmem:[%s2631_s22 + $0x150] sm:$0xff] %vm1415_vm1, %v1372_v39 }
 0x1b8   : > { %v1306_v36 = vpop.xlane.xlu1 %1305  ;;  %v1304_v44 = vpop.xlane.xlu0 %1303 }
 0x1b9   : > { %1425 = vst.msk [vmem:[%s2631_s22 + $0x48] sm:$0xff] %vm1415_vm1, %v1306_v36  ;;  %1424 = vst.msk [vmem:[%s2631_s22 + $0x40] sm:$0xff] %vm1415_vm1, %v1304_v44 }
 0x1bc   : > { %v1370_v45 = vpop.xlane.xlu1 %1369  ;;  %v1368_v41 = vpop.xlane.xlu0 %1367 }
 0x1bd   : > { %1457 = vst.msk [vmem:[%s2631_s22 + $0x148] sm:$0xff] %vm1415_vm1, %v1370_v45  ;;  %1456 = vst.msk [vmem:[%s2631_s22 + $0x140] sm:$0xff] %vm1415_vm1, %v1368_v41 }
 0x1c0   : > { %v1318_v42 = vpop.xlane.xlu1 %1317  ;;  %v1316_v6 = vpop.xlane.xlu0 %1315 }
 0x1c1   : > { %1431 = vst.msk [vmem:[%s2631_s22 + $0x78] sm:$0xff] %vm1415_vm1, %v1318_v42  ;;  %1430 = vst.msk [vmem:[%s2631_s22 + $0x70] sm:$0xff] %vm1415_vm1, %v1316_v6 }
 0x1c4   : > { %v1382_v49 = vpop.xlane.xlu1 %1381  ;;  %v1380_v1 = vpop.xlane.xlu0 %1379 }
 0x1c5   : > { %1463 = vst.msk [vmem:[%s2631_s22 + $0x178] sm:$0xff] %vm1415_vm1, %v1382_v49  ;;  %1462 = vst.msk [vmem:[%s2631_s22 + $0x170] sm:$0xff] %vm1415_vm1, %v1380_v1 }
 0x1c8   : > { %v1314_v50 = vpop.xlane.xlu1 %1313  ;;  %v1312_v51 = vpop.xlane.xlu0 %1311 }
 0x1c9   : > { %1429 = vst.msk [vmem:[%s2631_s22 + $0x68] sm:$0xff] %vm1415_vm1, %v1314_v50  ;;  %1428 = vst.msk [vmem:[%s2631_s22 + $0x60] sm:$0xff] %vm1415_vm1, %v1312_v51 }
 0x1cc   : > { %v1378_v52 = vpop.xlane.xlu1 %1377  ;;  %v1376_v7 = vpop.xlane.xlu0 %1375 }
 0x1cd   : > { %1461 = vst.msk [vmem:[%s2631_s22 + $0x168] sm:$0xff] %vm1415_vm1, %v1378_v52  ;;  %1460 = vst.msk [vmem:[%s2631_s22 + $0x160] sm:$0xff] %vm1415_vm1, %v1376_v7 }
 0x1d0   : > { %v1326_v53 = vpop.xlane.xlu1 %1325  ;;  %v1324_v54 = vpop.xlane.xlu0 %1323 }
 0x1d1   : > { %1435 = vst.msk [vmem:[%s2631_s22 + $0x98] sm:$0xff] %vm1415_vm1, %v1326_v53  ;;  %1434 = vst.msk [vmem:[%s2631_s22 + $0x90] sm:$0xff] %vm1415_vm1, %v1324_v54 }
 0x1d4   : > { %v1390_v55 = vpop.xlane.xlu1 %1389  ;;  %v1388_v5 = vpop.xlane.xlu0 %1387 }
 0x1d5   : > { %1467 = vst.msk [vmem:[%s2631_s22 + $0x198] sm:$0xff] %vm1415_vm1, %v1390_v55  ;;  %1466 = vst.msk [vmem:[%s2631_s22 + $0x190] sm:$0xff] %vm1415_vm1, %v1388_v5 }
 0x1d8   : > { %v1322_v56 = vpop.xlane.xlu1 %1321  ;;  %v1320_v57 = vpop.xlane.xlu0 %1319 }
 0x1d9   : > { %1433 = vst.msk [vmem:[%s2631_s22 + $0x88] sm:$0xff] %vm1415_vm1, %v1322_v56  ;;  %1432 = vst.msk [vmem:[%s2631_s22 + $0x80] sm:$0xff] %vm1415_vm1, %v1320_v57 }
 0x1dc   : > { %v1386_v58 = vpop.xlane.xlu1 %1385  ;;  %v1384_v8 = vpop.xlane.xlu0 %1383 }
 0x1dd   : > { %1465 = vst.msk [vmem:[%s2631_s22 + $0x188] sm:$0xff] %vm1415_vm1, %v1386_v58  ;;  %1464 = vst.msk [vmem:[%s2631_s22 + $0x180] sm:$0xff] %vm1415_vm1, %v1384_v8 }
 0x1e0   : > { %v1334_v59 = vpop.xlane.xlu1 %1333  ;;  %v1332_v60 = vpop.xlane.xlu0 %1331 }
 0x1e1   : > { %1439 = vst.msk [vmem:[%s2631_s22 + $0xb8] sm:$0xff] %vm1415_vm1, %v1334_v59  ;;  %1438 = vst.msk [vmem:[%s2631_s22 + $0xb0] sm:$0xff] %vm1415_vm1, %v1332_v60 }
 0x1e4   : > { %v1398_v61 = vpop.xlane.xlu1 %1397  ;;  %v1396_v31 = vpop.xlane.xlu0 %1395 }
 0x1e5   : > { %1471 = vst.msk [vmem:[%s2631_s22 + $0x1b8] sm:$0xff] %vm1415_vm1, %v1398_v61  ;;  %1470 = vst.msk [vmem:[%s2631_s22 + $0x1b0] sm:$0xff] %vm1415_vm1, %v1396_v31 }
 0x1e8   : > { %v1330_v11 = vpop.xlane.xlu1 %1329  ;;  %v1328_v47 = vpop.xlane.xlu0 %1327 }
 0x1e9   : > { %1437 = vst.msk [vmem:[%s2631_s22 + $0xa8] sm:$0xff] %vm1415_vm1, %v1330_v11  ;;  %1436 = vst.msk [vmem:[%s2631_s22 + $0xa0] sm:$0xff] %vm1415_vm1, %v1328_v47 }
 0x1ec   : > { %v1394_v62 = vpop.xlane.xlu1 %1393  ;;  %v1392_v38 = vpop.xlane.xlu0 %1391 }
 0x1ed   : > { %1469 = vst.msk [vmem:[%s2631_s22 + $0x1a8] sm:$0xff] %vm1415_vm1, %v1394_v62  ;;  %1468 = vst.msk [vmem:[%s2631_s22 + $0x1a0] sm:$0xff] %vm1415_vm1, %v1392_v38 }
 0x1f0   : > { %v1342_v63 = vpop.xlane.xlu1 %1341  ;;  %v1340_v2 = vpop.xlane.xlu0 %1339 }
 0x1f1   : > { %1443 = vst.msk [vmem:[%s2631_s22 + $0xd8] sm:$0xff] %vm1415_vm1, %v1342_v63  ;;  %1442 = vst.msk [vmem:[%s2631_s22 + $0xd0] sm:$0xff] %vm1415_vm1, %v1340_v2 }
 0x1f4   : > { %v1406_v3 = vpop.xlane.xlu1 %1405  ;;  %v1404_v37 = vpop.xlane.xlu0 %1403 }
 0x1f5   : > { %1475 = vst.msk [vmem:[%s2631_s22 + $0x1d8] sm:$0xff] %vm1415_vm1, %v1406_v3  ;;  %1474 = vst.msk [vmem:[%s2631_s22 + $0x1d0] sm:$0xff] %vm1415_vm1, %v1404_v37 }
 0x1f8   : > { %v1338_v4 = vpop.xlane.xlu1 %1337  ;;  %v1336_v46 = vpop.xlane.xlu0 %1335 }
 0x1f9   : > { %1441 = vst.msk [vmem:[%s2631_s22 + $0xc8] sm:$0xff] %vm1415_vm1, %v1338_v4  ;;  %1440 = vst.msk [vmem:[%s2631_s22 + $0xc0] sm:$0xff] %vm1415_vm1, %v1336_v46 }
 0x1fc   : > { %v1402_v34 = vpop.xlane.xlu1 %1401  ;;  %v1400_v43 = vpop.xlane.xlu0 %1399 }
 0x1fd   : > { %1473 = vst.msk [vmem:[%s2631_s22 + $0x1c8] sm:$0xff] %vm1415_vm1, %v1402_v34  ;;  %1472 = vst.msk [vmem:[%s2631_s22 + $0x1c0] sm:$0xff] %vm1415_vm1, %v1400_v43 }
 0x200   : > { %v1350_v10 = vpop.xlane.xlu1 %1349  ;;  %v1348_v15 = vpop.xlane.xlu0 %1347 }
 0x201   : > { %1447 = vst.msk [vmem:[%s2631_s22 + $0xf8] sm:$0xff] %vm1415_vm1, %v1350_v10  ;;  %1446 = vst.msk [vmem:[%s2631_s22 + $0xf0] sm:$0xff] %vm1415_vm1, %v1348_v15 }
 0x204   : > { %v1346_v0 = vpop.xlane.xlu1 %1345  ;;  %v1344_v16 = vpop.xlane.xlu0 %1343 }
 0x205   : > { %1445 = vst.msk [vmem:[%s2631_s22 + $0xe8] sm:$0xff] %vm1415_vm1, %v1346_v0  ;;  %1444 = vst.msk [vmem:[%s2631_s22 + $0xe0] sm:$0xff] %vm1415_vm1, %v1344_v16 }
 0x208   : > { %v1410_v17 = vpop.xlane.xlu1 %1409  ;;  %v1408_v18 = vpop.xlane.xlu0 %1407 }
 0x209   : > { %1477 = vst.msk [vmem:[%s2631_s22 + $0x1e8] sm:$0xff] %vm1415_vm1, %v1410_v17  ;;  %1476 = vst.msk [vmem:[%s2631_s22 + $0x1e0] sm:$0xff] %vm1415_vm1, %v1408_v18 }
 0x20c   : > { %v1414_v9 = vpop.xlane.xlu1 %1413  ;;  %v1412_v20 = vpop.xlane.xlu0 %1411 }
 0x20d   : > { %1479 = vst.msk [vmem:[%s2631_s22 + $0x1f8] sm:$0xff] %vm1415_vm1, %v1414_v9  ;;  %1478 = vst.msk [vmem:[%s2631_s22 + $0x1f0] sm:$0xff] %vm1415_vm1, %v1412_v20 }
 0x20e PF: > { %p2097_p5 = scmp.ge.s32.totalorder %s2227_s18, 2  ;;  %s1518_s25 = sand.u32 1, %s2215_s15  }
 0x20f   : > { %s1519_s27 = scalar_lea.sflag [#allocation3], %s1518_s25 }
 0x210   : > { %p2094_p1 = pnand %p2097_p5, %p2299_p6 }
 0x212   : > { %2210 = dma.done.wait (!%p2094_p1), %s1519_s27, 4096  }
 0x213   : > { %2212 = vsyncadd (!%p2094_p1), %s1519_s27, 4294963200  ;;  %p15_p2 = scmp.ge.s32.totalorder %s2282_s21, 4   ;;  %s2820_s15 = smov %s2219_s16 }
 0x214   : > { %s2821_s16 = smov %s2223_s17  ;;  %s2822_s17 = smov %s2293_s24 }
 0x215   : > { %s2823_s18 = smov %s2282_s21  ;;  %17 = sbr.rel (!%p15_p2) target bundleno = 3 (0x3), region = 79 }
 0x21c   :  { %1532 = vsyncpa [#allocation3], 1 }
 0x21d   :  { %1534 = vsyncpa [#allocation3 + $0x1], 1 }

</bundles_post_ra>
